<compile_context>
chip_gen: v6e
topology: v6e:2x2x1
jax: 0.10.0
libtpu: 0.0.40
codegen_flags: <defaults>
</compile_context>

<pallas_src>
import jax
import jax.numpy as jnp
import numpy as np
from jax.experimental import pallas as pl
from jax.experimental.pallas import tpu as pltpu

LANES = 128            # vreg lane width; max supported bits per addition
DEFAULT_ROW_TILE = 2048  # rows per grid step on the large-batch path


def adder_kernel(t1_ref, t2_ref, carry_ref, sum_ref, gw_ref, pw_ref):
    """Batched binary add via a Kogge-Stone carry-lookahead scan.

    t1_ref / t2_ref / carry_ref / sum_ref : [rows, n] int8, MSB-first bits.
    gw_ref / pw_ref : [rows, 128] int32 VMEM scratch (lane-widened G / P).
      carry_ref[r, i] = carry OUT of bit i   (== x_next_all[::-1])
      sum_ref[r, i]   = sum bit at position i (== y_this_all[::-1])
    """
    rows, n = t1_ref.shape

    a = t1_ref[...].astype(jnp.int32)
    b = t2_ref[...].astype(jnp.int32)
    g_small = a & b                      # carry "generate"
    p_small = a ^ b                      # carry "propagate"

    # Widen the bit axis to 128 lanes in VMEM only (HBM stays [rows, n] int8).
    # Zero fill past lane n-1 is the scan identity for G and is masked out for
    # P; a 128-wide lane dim keeps pltpu.roll on the full-vreg rotate path.
    gw_ref[...] = jnp.zeros(gw_ref.shape, gw_ref.dtype)
    pw_ref[...] = jnp.zeros(pw_ref.shape, pw_ref.dtype)
    gw_ref[:, 0:n] = g_small
    pw_ref[:, 0:n] = p_small
    G = gw_ref[...]
    P = pw_ref[...]

    lane = jax.lax.broadcasted_iota(jnp.int32, (rows, LANES), 1)

    # Kogge-Stone scan, ceil(log2(n)) steps.  Bits are MSB-first, so the carry
    # flows from high lane index (LSB) toward low lane index (MSB):
    #   shifted[i] = value[i + d], identity (G=0, P=1) once i + d >= n.
    d = 1
    while d < n:
        is_last = (2 * d) >= n
        mask = lane < (n - d)
        g_shift = jnp.where(mask, pltpu.roll(G, LANES - d, axis=1), 0)
        if not is_last:                  # P is dead after the final step
            p_shift = jnp.where(mask, pltpu.roll(P, LANES - d, axis=1), 1)
        G = G | (P & g_shift)
        if not is_last:
            P = P & p_shift
        d *= 2

    # G[:, i] is the carry OUT of bit i.  The carry INTO bit i is the carry
    # out of bit i+1 (0 at the LSB).
    cin = jnp.where(lane < (n - 1), pltpu.roll(G, LANES - 1, axis=1), 0)

    carry_ref[...] = G[:, 0:n].astype(jnp.int8)
    sum_ref[...] = (p_small ^ cin[:, 0:n]).astype(jnp.int8)


def _round_up(x, m):
    return ((x + m - 1) // m) * m


def adder_forward(t1, t2, *, row_tile=DEFAULT_ROW_TILE):
    """t1, t2: [B, N] MSB-first 0/1 bits -> (carries [B, N], sums [B, N]) int8."""
    t1 = jnp.asarray(t1, jnp.int8)
    t2 = jnp.asarray(t2, jnp.int8)
    if t1.ndim != 2 or t1.shape != t2.shape:
        raise ValueError("t1 and t2 must be [B, N] with matching shapes")
    B, N = t1.shape
    if not 1 <= N <= LANES:
        raise ValueError(f"bit width {N} must be in [1, {LANES}]")
    if row_tile % 8:
        raise ValueError("row_tile must be a multiple of 8")

    sds = jax.ShapeDtypeStruct

    if B <= row_tile:
        # Small batch: whole problem resident in VMEM, no grid, no padding.
        carries, sums = pl.pallas_call(
            adder_kernel,
            out_shape=(sds((B, N), jnp.int8), sds((B, N), jnp.int8)),
            in_specs=[pl.BlockSpec(memory_space=pltpu.MemorySpace.VMEM)] * 2,
            out_specs=(pl.BlockSpec(memory_space=pltpu.MemorySpace.VMEM),) * 2,
            scratch_shapes=[pltpu.VMEM((B, LANES), jnp.int32),
                            pltpu.VMEM((B, LANES), jnp.int32)],
        )(t1, t2)
        return carries, sums

    # Large batch: row-tiled parallel grid (uses both TensorCores on v7x and
    # keeps double-buffered blocks far below the scoped-VMEM default).
    Bp = _round_up(B, row_tile)
    t1p = jnp.pad(t1, ((0, Bp - B), (0, 0)))
    t2p = jnp.pad(t2, ((0, Bp - B), (0, 0)))
    spec = pl.BlockSpec((row_tile, N), lambda i: (i, 0))
    carries, sums = pl.pallas_call(
        adder_kernel,
        out_shape=(sds((Bp, N), jnp.int8), sds((Bp, N), jnp.int8)),
        grid=(Bp // row_tile,),
        in_specs=[spec, spec],
        out_specs=(spec, spec),
        scratch_shapes=[pltpu.VMEM((row_tile, LANES), jnp.int32),
                        pltpu.VMEM((row_tile, LANES), jnp.int32)],
        compiler_params=pltpu.CompilerParams(
            dimension_semantics=("parallel",)),
    )(t1p, t2p)
    return carries[:B], sums[:B]


# ---------------------------------------------------------------------------
# Pure-Python reference mirroring the PyTorch module exactly.
# ---------------------------------------------------------------------------
ADD_LOGIC = {(0, 0, 0): (0, 0), (0, 0, 1): (0, 1), (0, 1, 0): (0, 1),
             (0, 1, 1): (1, 0), (1, 0, 0): (0, 1), (1, 0, 1): (1, 0),
             (1, 1, 0): (1, 0), (1, 1, 1): (1, 1)}


def ref_adder(t1_bits, t2_bits):
    t1 = t1_bits[::-1]
    t2 = t2_bits[::-1]
    x_next_all, y_this_all = [], []
    for i in range(len(t1)):
        last = 0 if i == 0 else x_next_all[-1]
        x_next, y_this = ADD_LOGIC[(t1[i], t2[i], last)]
        x_next_all.append(x_next)
        y_this_all.append(y_this)
    return x_next_all[::-1], y_this_all[::-1]


def _check(t1, t2, carries, sums):
    t1_np, t2_np = np.asarray(t1), np.asarray(t2)
    c_np, s_np = np.asarray(carries), np.asarray(sums)
    for r in range(t1_np.shape[0]):
        ref_c, ref_s = ref_adder([int(x) for x in t1_np[r]],
                                 [int(x) for x in t2_np[r]])
        assert [int(x) for x in c_np[r]] == ref_c, (r, list(c_np[r]), ref_c)
        assert [int(x) for x in s_np[r]] == ref_s, (r, list(s_np[r]), ref_s)


if __name__ == "__main__":
    key = jax.random.PRNGKey(0)
    k1, k2, k3, k4 = jax.random.split(key, 4)

    # Case 1: tiny batch -> grid-less, whole-problem-in-VMEM path.
    B, N = 8, 16
    t1 = jax.random.bernoulli(k1, 0.5, (B, N)).astype(jnp.int8)
    t2 = jax.random.bernoulli(k2, 0.5, (B, N)).astype(jnp.int8)
    carries, sums = jax.block_until_ready(adder_forward(t1, t2))
    _check(t1, t2, carries, sums)

    # Case 2: row-tiled parallel-grid path (small shapes, forced via row_tile;
    # also exercises non-multiple row count and a non-power-of-2 bit width).
    B2, N2 = 29, 20
    u1 = jax.random.bernoulli(k3, 0.5, (B2, N2)).astype(jnp.int8)
    u2 = jax.random.bernoulli(k4, 0.5, (B2, N2)).astype(jnp.int8)
    c2, s2 = jax.block_until_ready(adder_forward(u1, u2, row_tile=8))
    _check(u1, u2, c2, s2)

    print("KERNEL_OK")
</pallas_src>

<mosaic_0001>
module attributes {stable_mosaic.version = 11 : i64} {
  func.func @adder_kernel(%arg0: memref<8x16xi8, #tpu.memory_space<vmem>>, %arg1: memref<8x16xi8, #tpu.memory_space<vmem>>, %arg2: memref<8x16xi8, #tpu.memory_space<vmem>>, %arg3: memref<8x16xi8, #tpu.memory_space<vmem>>, %arg4: memref<8x128xi32, #tpu.memory_space<vmem>>, %arg5: memref<8x128xi32, #tpu.memory_space<vmem>>) attributes {dimension_semantics = [], scalar_prefetch = 0 : i64, scratch_operands = 2 : i64, tpu.core_type = #tpu.core_type<tc>} {
    %c0 = arith.constant 0 : index
    %c0_0 = arith.constant 0 : index
    %0 = vector.load %arg0[%c0, %c0_0] : memref<8x16xi8, #tpu.memory_space<vmem>>, vector<8x16xi8>
    %1 = arith.extsi %0 : vector<8x16xi8> to vector<8x16xi32>
    %c0_1 = arith.constant 0 : index
    %c0_2 = arith.constant 0 : index
    %2 = vector.load %arg1[%c0_1, %c0_2] : memref<8x16xi8, #tpu.memory_space<vmem>>, vector<8x16xi8>
    %3 = arith.extsi %2 : vector<8x16xi8> to vector<8x16xi32>
    %4 = arith.andi %1, %3 : vector<8x16xi32>
    %5 = arith.xori %1, %3 : vector<8x16xi32>
    %c0_i32 = arith.constant 0 : i32
    %6 = vector.broadcast %c0_i32 : i32 to vector<8x128xi32>
    %c0_3 = arith.constant 0 : index
    %c0_4 = arith.constant 0 : index
    %7 = vector.load %arg4[%c0_3, %c0_4] : memref<8x128xi32, #tpu.memory_space<vmem>>, vector<8x128xi32>
    tpu.vector_store %arg4[%c0_3, %c0_4], %6 {strides = array<i32>} : memref<8x128xi32, #tpu.memory_space<vmem>>, vector<8x128xi32>,
    %c0_i32_5 = arith.constant 0 : i32
    %8 = vector.broadcast %c0_i32_5 : i32 to vector<8x128xi32>
    %c0_6 = arith.constant 0 : index
    %c0_7 = arith.constant 0 : index
    %9 = vector.load %arg5[%c0_6, %c0_7] : memref<8x128xi32, #tpu.memory_space<vmem>>, vector<8x128xi32>
    tpu.vector_store %arg5[%c0_6, %c0_7], %8 {strides = array<i32>} : memref<8x128xi32, #tpu.memory_space<vmem>>, vector<8x128xi32>,
    %c0_8 = arith.constant 0 : index
    %c0_9 = arith.constant 0 : index
    %10 = vector.load %arg4[%c0_8, %c0_9] : memref<8x128xi32, #tpu.memory_space<vmem>>, vector<8x16xi32>
    tpu.vector_store %arg4[%c0_8, %c0_9], %4 {strides = array<i32>} : memref<8x128xi32, #tpu.memory_space<vmem>>, vector<8x16xi32>,
    %c0_10 = arith.constant 0 : index
    %c0_11 = arith.constant 0 : index
    %11 = vector.load %arg5[%c0_10, %c0_11] : memref<8x128xi32, #tpu.memory_space<vmem>>, vector<8x16xi32>
    tpu.vector_store %arg5[%c0_10, %c0_11], %5 {strides = array<i32>} : memref<8x128xi32, #tpu.memory_space<vmem>>, vector<8x16xi32>,
    %c0_12 = arith.constant 0 : index
    %c0_13 = arith.constant 0 : index
    %12 = vector.load %arg4[%c0_12, %c0_13] : memref<8x128xi32, #tpu.memory_space<vmem>>, vector<8x128xi32>
    %c0_14 = arith.constant 0 : index
    %c0_15 = arith.constant 0 : index
    %13 = vector.load %arg5[%c0_14, %c0_15] : memref<8x128xi32, #tpu.memory_space<vmem>>, vector<8x128xi32>
    %14 = tpu.iota {dimensions = array<i32: 1>} : vector<8x128xi32>
    %c15_i32 = arith.constant 15 : i32
    %15 = vector.broadcast %c15_i32 : i32 to vector<8x128xi32>
    %16 = arith.cmpi slt, %14, %15 : vector<8x128xi32>
    %c127_i32 = arith.constant 127 : i32
    %17 = tpu.dynamic_rotate %12 by %c127_i32 dim 1 : vector<8x128xi32>, i32 -> vector<8x128xi32>
    %c0_i32_16 = arith.constant 0 : i32
    %18 = vector.broadcast %c0_i32_16 : i32 to vector<8x128xi32>
    %19 = arith.select %16, %17, %18 : vector<8x128xi1>, vector<8x128xi32>
    %c127_i32_17 = arith.constant 127 : i32
    %20 = tpu.dynamic_rotate %13 by %c127_i32_17 dim 1 : vector<8x128xi32>, i32 -> vector<8x128xi32>
    %c1_i32 = arith.constant 1 : i32
    %21 = vector.broadcast %c1_i32 : i32 to vector<8x128xi32>
    %22 = arith.select %16, %20, %21 : vector<8x128xi1>, vector<8x128xi32>
    %23 = arith.andi %13, %19 : vector<8x128xi32>
    %24 = arith.ori %12, %23 : vector<8x128xi32>
    %25 = arith.andi %13, %22 : vector<8x128xi32>
    %c14_i32 = arith.constant 14 : i32
    %26 = vector.broadcast %c14_i32 : i32 to vector<8x128xi32>
    %27 = arith.cmpi slt, %14, %26 : vector<8x128xi32>
    %c126_i32 = arith.constant 126 : i32
    %28 = tpu.dynamic_rotate %24 by %c126_i32 dim 1 : vector<8x128xi32>, i32 -> vector<8x128xi32>
    %c0_i32_18 = arith.constant 0 : i32
    %29 = vector.broadcast %c0_i32_18 : i32 to vector<8x128xi32>
    %30 = arith.select %27, %28, %29 : vector<8x128xi1>, vector<8x128xi32>
    %c126_i32_19 = arith.constant 126 : i32
    %31 = tpu.dynamic_rotate %25 by %c126_i32_19 dim 1 : vector<8x128xi32>, i32 -> vector<8x128xi32>
    %c1_i32_20 = arith.constant 1 : i32
    %32 = vector.broadcast %c1_i32_20 : i32 to vector<8x128xi32>
    %33 = arith.select %27, %31, %32 : vector<8x128xi1>, vector<8x128xi32>
    %34 = arith.andi %25, %30 : vector<8x128xi32>
    %35 = arith.ori %24, %34 : vector<8x128xi32>
    %36 = arith.andi %25, %33 : vector<8x128xi32>
    %c12_i32 = arith.constant 12 : i32
    %37 = vector.broadcast %c12_i32 : i32 to vector<8x128xi32>
    %38 = arith.cmpi slt, %14, %37 : vector<8x128xi32>
    %c124_i32 = arith.constant 124 : i32
    %39 = tpu.dynamic_rotate %35 by %c124_i32 dim 1 : vector<8x128xi32>, i32 -> vector<8x128xi32>
    %c0_i32_21 = arith.constant 0 : i32
    %40 = vector.broadcast %c0_i32_21 : i32 to vector<8x128xi32>
    %41 = arith.select %38, %39, %40 : vector<8x128xi1>, vector<8x128xi32>
    %c124_i32_22 = arith.constant 124 : i32
    %42 = tpu.dynamic_rotate %36 by %c124_i32_22 dim 1 : vector<8x128xi32>, i32 -> vector<8x128xi32>
    %c1_i32_23 = arith.constant 1 : i32
    %43 = vector.broadcast %c1_i32_23 : i32 to vector<8x128xi32>
    %44 = arith.select %38, %42, %43 : vector<8x128xi1>, vector<8x128xi32>
    %45 = arith.andi %36, %41 : vector<8x128xi32>
    %46 = arith.ori %35, %45 : vector<8x128xi32>
    %47 = arith.andi %36, %44 : vector<8x128xi32>
    %c8_i32 = arith.constant 8 : i32
    %48 = vector.broadcast %c8_i32 : i32 to vector<8x128xi32>
    %49 = arith.cmpi slt, %14, %48 : vector<8x128xi32>
    %c120_i32 = arith.constant 120 : i32
    %50 = tpu.dynamic_rotate %46 by %c120_i32 dim 1 : vector<8x128xi32>, i32 -> vector<8x128xi32>
    %c0_i32_24 = arith.constant 0 : i32
    %51 = vector.broadcast %c0_i32_24 : i32 to vector<8x128xi32>
    %52 = arith.select %49, %50, %51 : vector<8x128xi1>, vector<8x128xi32>
    %53 = arith.andi %47, %52 : vector<8x128xi32>
    %54 = arith.ori %46, %53 : vector<8x128xi32>
    %c15_i32_25 = arith.constant 15 : i32
    %55 = vector.broadcast %c15_i32_25 : i32 to vector<8x128xi32>
    %56 = arith.cmpi slt, %14, %55 : vector<8x128xi32>
    %c127_i32_26 = arith.constant 127 : i32
    %57 = tpu.dynamic_rotate %54 by %c127_i32_26 dim 1 : vector<8x128xi32>, i32 -> vector<8x128xi32>
    %c0_i32_27 = arith.constant 0 : i32
    %58 = vector.broadcast %c0_i32_27 : i32 to vector<8x128xi32>
    %59 = arith.select %56, %57, %58 : vector<8x128xi1>, vector<8x128xi32>
    %60 = vector.extract_strided_slice %54 {offsets = [0, 0], sizes = [8, 16], strides = [1, 1]} : vector<8x128xi32> to vector<8x16xi32>
    %61 = arith.trunci %60 : vector<8x16xi32> to vector<8x16xi8>
    %c0_28 = arith.constant 0 : index
    %c0_29 = arith.constant 0 : index
    %62 = vector.load %arg2[%c0_28, %c0_29] : memref<8x16xi8, #tpu.memory_space<vmem>>, vector<8x16xi8>
    tpu.vector_store %arg2[%c0_28, %c0_29], %61 {strides = array<i32>} : memref<8x16xi8, #tpu.memory_space<vmem>>, vector<8x16xi8>,
    %63 = vector.extract_strided_slice %59 {offsets = [0, 0], sizes = [8, 16], strides = [1, 1]} : vector<8x128xi32> to vector<8x16xi32>
    %64 = arith.xori %5, %63 : vector<8x16xi32>
    %65 = arith.trunci %64 : vector<8x16xi32> to vector<8x16xi8>
    %c0_30 = arith.constant 0 : index
    %c0_31 = arith.constant 0 : index
    %66 = vector.load %arg3[%c0_30, %c0_31] : memref<8x16xi8, #tpu.memory_space<vmem>>, vector<8x16xi8>
    tpu.vector_store %arg3[%c0_30, %c0_31], %65 {strides = array<i32>} : memref<8x16xi8, #tpu.memory_space<vmem>>, vector<8x16xi8>,
    return
  }
}

</mosaic_0001>

<bundles_post_ra>
// kernel: tpu_custom_call.1
= control target key start
LH: loop header
LB: loop body
LE: loop exit
PB: predicated region body
PF: predicated region fallthrough
CT: control target
= control target key end

     0   :  { %9 = vsyncpa [#allocation5], 0  ;;  %s281_s0 = inlined_call_operand.hbm [shape: s8[8,16], index: 0, kind: input, shape index: {}]   ;;  %s282_s1 = inlined_call_operand.hbm [shape: s8[8,16], index: 1, kind: input, shape index: {}]   ;;  %s283_s2 = inlined_call_operand.hbm [shape: s8[8,16], index: 2, kind: output, shape index: {0}]   ;;  %s284_s3 = inlined_call_operand.hbm [shape: s8[8,16], index: 3, kind: output, shape index: {1}]  }
   0x1   :  { %10 = vsyncpa [#allocation8], 0 }
   0x2   :  { %11 = vsyncpa [#allocation6], 0 }
   0x3   :  { %12 = vsyncpa [#allocation11], 0  ;;  %s228_s12 = smov [#allocation4]   ;;  %s229_s14 = smov [#allocation7]  }
   0x4   :  { %s19_s13 = sshll.u32 %s228_s12, 4  ;;  %s29_s15 = sshll.u32 %s229_s14, 4  ;;  %s20_s13 = int_to_ptr.vmem [resolvable:$true] %s19_s13  ;;  %s30_s15 = int_to_ptr.vmem [resolvable:$true] %s29_s15 }
   0x5   :  { %s148_s16 = scalar_lea.vmem %s20_s13, 32  ;;  %p153_p1 = scmp.lt.s32.totalorder %s20_s13, %s20_s13 }
   0x6   :  { %p149_p0 = scmp.ne.s32.totalorder %s20_s13, %s148_s16  ;;  %p154_p2 = scmp.lt.s32.totalorder %s148_s16, %s148_s16 }
   0x8   :  { %p155_p3 = por %p154_p2, %p153_p1 }
   0xa   :  { %p156_p4 = pnand %p155_p3, %p149_p0 }
   0xc   :  { %159 = shalt.err (!%p156_p4)
}
   0xd   :  { %22 = dma.hbm_to_vmem [thread:$0]  %s281_s0, 32, %s20_s13, [#allocation5]  }
   0xe   :  { %s168_s19 = scalar_lea.vmem %s30_s15, 32  ;;  %p173_p6 = scmp.lt.s32.totalorder %s30_s15, %s30_s15 }
   0xf   :  { %p169_p5 = scmp.ne.s32.totalorder %s30_s15, %s168_s19  ;;  %p174_p7 = scmp.lt.s32.totalorder %s168_s19, %s168_s19 }
  0x11   :  { %p175_p8 = por %p174_p7, %p173_p6 }
  0x13   :  { %p176_p9 = pnand %p175_p8, %p169_p5 }
  0x15   :  { %179 = shalt.err (!%p176_p9)
}
  0x16   :  { %32 = dma.hbm_to_vmem [thread:$0]  %s282_s1, 32, %s30_s15, [#allocation8]  }
  0x17   :  { %220 = dma.done.wait [#allocation5], 32  }
  0x18   :  { %221 = vsyncadd [#allocation5], 4294967264 }
  0x19   :  { %222 = dma.done.wait [#allocation8], 32  }
  0x1a   :  { %223 = vsyncadd [#allocation8], 4294967264  ;;  %v230_v0 = vmov 0   ;;  %v39_v1 = vld [vmem:[#allocation4] sm:$0x3]  ;;  %vm47_vm0 = vcmask 130048   ;;  %v52_v9 = vlaneseq }
  0x1b   :  { %45 = vst [vmem:[#allocation2] sm:$0xff] %v230_v0  ;;  %46 = vst [vmem:[#allocation3] sm:$0xff] %v230_v0  ;;  %v40_v2 = vld [vmem:[#allocation7] sm:$0x3]  ;;  %s231_s0 = smov 127   ;;  %s232_s1 = smov 126  }
  0x1c   :  { %v41_v3 = vand.u32 %v40_v2, %v39_v1  ;;  %v43_v4 = vxor.u32 %v40_v2, %v39_v1  ;;  %v53_v10 = vand.u32 127, %v52_v9  ;;  %s233_s22 = smov 124   ;;  %s234_s23 = smov 120   ;;  %vm95_vm5 = vcmask 123904  }
  0x1d   :  { %s235_s24 = smov [#allocation9]  }
  0x1e   :  { %v42_v5 = vunpack.c.0.s8 %v41_v3  ;;  %v263_v6 = vunpack.c.0.s8 %v43_v4  ;;  %vm54_vm1 = vcmp.lt.s32.totalorder %v53_v10, 15  ;;  %vm64_vm2 = vcmp.lt.s32.totalorder %v53_v10, 14  ;;  %s107_s25 = sshll.u32 %s235_s24, 4  ;;  %s108_s25 = int_to_ptr.vmem [resolvable:$true] %s107_s25 }
  0x1f   :  { %vm74_vm3 = vcmp.lt.s32.totalorder %v53_v10, 12  ;;  %vm84_vm4 = vcmp.lt.s32.totalorder %v53_v10, 8  ;;  %s180_s26 = scalar_lea.vmem %s108_s25, 32  ;;  %p185_p11 = scmp.lt.s32.totalorder %s108_s25, %s108_s25 }
  0x20   :  { %48 = vst.msk [vmem:[#allocation2] sm:$0xff] %vm47_vm0, %v42_v5  ;;  %49 = vst.msk [vmem:[#allocation3] sm:$0xff] %vm47_vm0, %v263_v6  ;;  %p181_p10 = scmp.ne.s32.totalorder %s108_s25, %s180_s26  ;;  %p186_p12 = scmp.lt.s32.totalorder %s180_s26, %s180_s26 }
  0x22   :  { %p187_p13 = por %p186_p12, %p185_p11 }
  0x24   :  { %p188_p0 = pnand %p187_p13, %p181_p10 }
  0x27   :  { %v50_v7 = vld [vmem:[#allocation2] sm:$0xff]  ;;  %v51_v8 = vld [vmem:[#allocation3] sm:$0xff] }
  0x28   :  { %55 = vrot.lane.b32.xlu0 %v50_v7, %s231_s0 }
  0x2c   :  { %58 = vrot.lane.b32.xlu0 %v51_v8, %s231_s0 }
  0x9a   :  { %v56_v11 = vpop.permute.xlu0 %55 }
  0x9b   :  { %v57_v12 = vsel %vm54_vm1, %v56_v11, 0 }
  0x9c   :  { %v61_v13 = vand.u32 %v57_v12, %v51_v8 }
  0x9e   :  { %v62_v14 = vor.u32 %v61_v13, %v50_v7  ;;  %v59_v15 = vpop.permute.xlu0 %58 }
  0x9f   :  { %v60_v16 = vsel %vm54_vm1, %v59_v15, 1 }
  0xa0   :  { %65 = vrot.lane.b32.xlu1 %v62_v14, %s232_s1  ;;  %v63_v17 = vand.u32 %v60_v16, %v51_v8 }
  0xa4   :  { %68 = vrot.lane.b32.xlu1 %v63_v17, %s232_s1 }
 0x112   :  { %v66_v18 = vpop.permute.xlu1 %65 }
 0x113   :  { %v67_v19 = vsel %vm64_vm2, %v66_v18, 0 }
 0x114   :  { %v71_v20 = vand.u32 %v67_v19, %v63_v17 }
 0x116   :  { %v72_v21 = vor.u32 %v71_v20, %v62_v14  ;;  %v69_v22 = vpop.permute.xlu1 %68 }
 0x117   :  { %v70_v23 = vsel %vm64_vm2, %v69_v22, 1 }
 0x118   :  { %v73_v24 = vand.u32 %v70_v23, %v63_v17  ;;  %75 = vrot.lane.b32.xlu0 %v72_v21, %s233_s22 }
 0x11a   :  { %78 = vrot.lane.b32.xlu1 %v73_v24, %s233_s22 }
 0x18a   :  { %v76_v25 = vpop.permute.xlu0 %75 }
 0x18b   :  { %v77_v26 = vsel %vm74_vm3, %v76_v25, 0 }
 0x18c   :  { %v81_v27 = vand.u32 %v77_v26, %v73_v24  ;;  %v79_v29 = vpop.permute.xlu1 %78 }
 0x18d   :  { %v80_v30 = vsel %vm74_vm3, %v79_v29, 1 }
 0x18e   :  { %v82_v28 = vor.u32 %v81_v27, %v72_v21  ;;  %v83_v31 = vand.u32 %v80_v30, %v73_v24 }
 0x190   :  { %85 = vrot.lane.b32.xlu0 %v82_v28, %s234_s23 }
 0x202   :  { %v86_v32 = vpop.permute.xlu0 %85 }
 0x203   :  { %v87_v33 = vsel %vm84_vm4, %v86_v32, 0 }
 0x204   :  { %v88_v34 = vand.u32 %v87_v33, %v83_v31 }
 0x206   :  { %v89_v35 = vor.u32 %v88_v34, %v82_v28 }
 0x208   :  { %v93_v36 = vpack.c.b16 %v89_v35, %v89_v35  ;;  %90 = vrot.lane.b32.xlu1 %v89_v35, %s231_s0 }
 0x20a   :  { %v94_v37 = vpack.c.b8 %v93_v36, %v93_v36 }
 0x20c   :  { %96 = vst.msk [vmem:[#allocation9] sm:$0x3] %vm95_vm5, %v94_v37 }
 0x20d   :  { %191 = shalt.err (!%p188_p0)
}
 0x20e   :  { %110 = dma.vmem_to_hbm [thread:$0]  %s108_s25, 32, %s283_s2, [#allocation6]  }
 0x20f   :  { %s236_s29 = smov [#allocation10]  }
 0x210   :  { %s117_s30 = sshll.u32 %s236_s29, 4  ;;  %s118_s30 = int_to_ptr.vmem [resolvable:$true] %s117_s30 }
 0x211   :  { %s200_s4 = scalar_lea.vmem %s118_s30, 32  ;;  %p205_p2 = scmp.lt.s32.totalorder %s118_s30, %s118_s30 }
 0x212   :  { %p201_p1 = scmp.ne.s32.totalorder %s118_s30, %s200_s4  ;;  %p206_p3 = scmp.lt.s32.totalorder %s200_s4, %s200_s4 }
 0x214   :  { %p207_p4 = por %p206_p3, %p205_p2 }
 0x216   :  { %p208_p5 = pnand %p207_p4, %p201_p1 }
 0x27a   :  { %v91_v38 = vpop.permute.xlu1 %90 }
 0x27b   :  { %v92_v39 = vsel %vm54_vm1, %v91_v38, 0 }
 0x27c   :  { %v97_v40 = vxor.u32 %v92_v39, %v263_v6 }
 0x27e   :  { %v98_v41 = vpack.c.b16 %v97_v40, %v97_v40 }
 0x280   :  { %v99_v42 = vpack.c.b8 %v98_v41, %v98_v41 }
 0x282   :  { %100 = vst.msk [vmem:[#allocation10] sm:$0x3] %vm95_vm5, %v99_v42 }
 0x283   :  { %211 = shalt.err (!%p208_p5)
}
 0x284   :  { %120 = dma.vmem_to_hbm [thread:$0]  %s118_s30, 32, %s284_s3, [#allocation11]  }
 0x285   :  { %224 = dma.done.wait [#allocation6], 32  }
 0x286   :  { %225 = vsyncadd [#allocation6], 4294967264 }
 0x287   :  { %226 = dma.done.wait [#allocation11], 32  }
 0x288   :  { %227 = vsyncadd [#allocation11], 4294967264 }
 0x289   :  { %127 = vsyncpa [#allocation5], 1 }
 0x28a   :  { %128 = vsyncpa [#allocation8], 1 }
 0x28b   :  { %129 = vsyncpa [#allocation6], 1 }
 0x28c   :  { %130 = vsyncpa [#allocation11], 1 }

</bundles_post_ra>
